<compile_context>
chip_gen: v6e
topology: v6e:2x2x1
jax: 0.10.0
libtpu: 0.0.40
codegen_flags: <defaults>
</compile_context>

<pallas_src>
import functools

import jax
import jax.numpy as jnp
from jax.experimental import pallas as pl
from jax.experimental.pallas import tpu as pltpu


def value_mlp_kernel(x_ref, w1_ref, b1_ref, w2_ref, b2_ref, w3_ref, b3_ref, out_ref,
                     *, matmul_dtype):
    """Fused 3-layer MLP: relu(x@W1+b1) -> relu(h@W2+b2) -> h@w3+b3 (scalar head).

    out_ref is lane-dense: shape (1, TB) with the batch tile along lanes.
    """
    x = x_ref[...]

    # fc1 + ReLU (MXU matmul with f32 accumulation; bias add / ReLU stay in f32
    # on the VPU so v5e, which lacks bf16 VPU support, is unaffected).
    h1 = jnp.dot(x.astype(matmul_dtype), w1_ref[...].astype(matmul_dtype),
                 preferred_element_type=jnp.float32) + b1_ref[...]
    h1 = jnp.maximum(h1, 0.0)

    # fc2 + ReLU
    h2 = jnp.dot(h1.astype(matmul_dtype), w2_ref[...].astype(matmul_dtype),
                 preferred_element_type=jnp.float32) + b2_ref[...]
    h2 = jnp.maximum(h2, 0.0)

    # fc3: output dim is 1, so skip the MXU entirely — elementwise multiply on the
    # VPU + cross-lane reduce on the XLU, then store the result lane-dense.
    v = jnp.sum(h2 * w3_ref[...], axis=-1)           # (TB,)
    v = v.reshape(1, -1) + b3_ref[...]               # (1, TB), lane-dense
    out_ref[...] = v.astype(out_ref.dtype)


def _round_up(n, m):
    return ((n + m - 1) // m) * m


def value_forward(x, params, *, matmul_dtype=jnp.float32, block_batch=512):
    """Forward pass of the `value` module.

    x: (B, input_size) f32. Returns (B, 1) f32.
    """
    w1, b1, w2, b2, w3, b3 = params
    B, in_features = x.shape
    hidden = w1.shape[1]

    # fc3 weight as a lane-dense row (1, hidden) for the VPU multiply + reduce.
    w3_row = w3.reshape(1, hidden)

    # Batch tiling: one full block when the batch is small; otherwise 512-row
    # tiles (mem-bound kernels only approach the HBM roofline at tile >= 512).
    if B <= block_batch:
        tb = _round_up(B, 8)          # keep the sublane dim 8-aligned
    else:
        tb = block_batch
    b_padded = _round_up(B, tb)
    if b_padded != B:
        x = jnp.pad(x, ((0, b_padded - B), (0, 0)))

    grid = (b_padded // tb,)
    kernel = functools.partial(value_mlp_kernel, matmul_dtype=matmul_dtype)

    out = pl.pallas_call(
        kernel,
        out_shape=jax.ShapeDtypeStruct((1, b_padded), jnp.float32),
        grid=grid,
        in_specs=[
            # activations: tiled over the batch grid
            pl.BlockSpec((tb, in_features), lambda i: (i, 0)),
            # weights / biases: constant index_map -> stay VMEM-resident
            pl.BlockSpec((in_features, hidden), lambda i: (0, 0)),
            pl.BlockSpec((1, hidden), lambda i: (0, 0)),
            pl.BlockSpec((hidden, hidden), lambda i: (0, 0)),
            pl.BlockSpec((1, hidden), lambda i: (0, 0)),
            pl.BlockSpec((1, hidden), lambda i: (0, 0)),
            pl.BlockSpec((1, 1), lambda i: (0, 0)),
        ],
        # lane-dense output: batch along the 128-lane axis
        out_specs=pl.BlockSpec((1, tb), lambda i: (0, i)),
        compiler_params=pltpu.CompilerParams(
            dimension_semantics=("parallel",)),
    )(x, w1, b1, w2, b2, w3_row, b3)

    # back to the PyTorch module's (B, 1) output shape
    return out[:, :B].reshape(B, 1)


def init_params(key, input_size, hidden):
    """Deterministic init matching the PyTorch module:
       fc1, fc2: kaiming_normal_ (He normal, fan_in, gain=sqrt(2)), bias=0
       fc3:      xavier_uniform_, bias=0
       Weights returned transposed as [in, out] for x @ W."""
    k1, k2, k3 = jax.random.split(key, 3)

    # He normal: std = sqrt(2 / fan_in); PyTorch fan_in for Linear is in_features.
    std1 = (2.0 / input_size) ** 0.5
    w1 = jax.random.normal(k1, (input_size, hidden), jnp.float32) * std1
    b1 = jnp.zeros((1, hidden), jnp.float32)

    std2 = (2.0 / hidden) ** 0.5
    w2 = jax.random.normal(k2, (hidden, hidden), jnp.float32) * std2
    b2 = jnp.zeros((1, hidden), jnp.float32)

    # Xavier uniform: bound = sqrt(6 / (fan_in + fan_out)) = sqrt(6 / (hidden + 1))
    bound3 = (6.0 / (hidden + 1)) ** 0.5
    w3 = jax.random.uniform(k3, (hidden, 1), jnp.float32, minval=-bound3, maxval=bound3)
    b3 = jnp.zeros((1, 1), jnp.float32)

    return (w1, b1, w2, b2, w3, b3)


if __name__ == "__main__":
    key = jax.random.PRNGKey(0)
    kx, kp = jax.random.split(key)

    batch, input_size, hidden = 8, 16, 32
    x = jax.random.normal(kx, (batch, input_size), jnp.float32)
    params = init_params(kp, input_size, hidden)
    w1, b1, w2, b2, w3, b3 = params

    def ref_fwd(xx):
        h = jnp.maximum(xx @ w1 + b1, 0.0)
        h = jnp.maximum(h @ w2 + b2, 0.0)
        return h @ w3 + b3

    # 1) small-batch path (single full block), f32 matmuls — exact check
    out = value_forward(x, params)
    jax.block_until_ready(out)
    assert out.shape == (batch, 1)
    assert jnp.allclose(out, ref_fwd(x), atol=1e-5, rtol=1e-5)

    # 2) larger batch exercising the batch grid (tiled x, padded batch, parallel axis)
    big_batch = 1040
    xb = jax.random.normal(kx, (big_batch, input_size), jnp.float32)
    out_b = value_forward(xb, params)
    jax.block_until_ready(out_b)
    assert out_b.shape == (big_batch, 1)
    assert jnp.allclose(out_b, ref_fwd(xb), atol=1e-4, rtol=1e-4)

    # 3) bf16 matmul-input path (v6e/v7x MXU lever) — looser tolerance
    out_bf16 = value_forward(x, params, matmul_dtype=jnp.bfloat16)
    jax.block_until_ready(out_bf16)
    assert jnp.allclose(out_bf16, ref_fwd(x), atol=5e-2, rtol=5e-2)

    print("KERNEL_OK")
</pallas_src>

<mosaic_0001>
module attributes {stable_mosaic.version = 11 : i64} {
  func.func @value_mlp_kernel(%arg0: i32, %arg1: memref<8x16xf32, #tpu.memory_space<vmem>>, %arg2: memref<16x32xf32, #tpu.memory_space<vmem>>, %arg3: memref<1x32xf32, #tpu.memory_space<vmem>>, %arg4: memref<32x32xf32, #tpu.memory_space<vmem>>, %arg5: memref<1x32xf32, #tpu.memory_space<vmem>>, %arg6: memref<1x32xf32, #tpu.memory_space<vmem>>, %arg7: memref<1x1xf32, #tpu.memory_space<vmem>>, %arg8: memref<1x8xf32, #tpu.memory_space<vmem>>) attributes {dimension_semantics = [#tpu.dimension_semantics<parallel>], iteration_bounds = array<i64: 1>, scalar_prefetch = 0 : i64, scratch_operands = 0 : i64, tpu.core_type = #tpu.core_type<tc>, window_params = [{transform_indices = @transform_0, window_bounds = array<i64: 8, 16>}, {pipeline_mode = #tpu.pipeline_mode<synchronous>, transform_indices = @transform_1, window_bounds = array<i64: 16, 32>}, {pipeline_mode = #tpu.pipeline_mode<synchronous>, transform_indices = @transform_2, window_bounds = array<i64: 1, 32>}, {pipeline_mode = #tpu.pipeline_mode<synchronous>, transform_indices = @transform_3, window_bounds = array<i64: 32, 32>}, {pipeline_mode = #tpu.pipeline_mode<synchronous>, transform_indices = @transform_4, window_bounds = array<i64: 1, 32>}, {pipeline_mode = #tpu.pipeline_mode<synchronous>, transform_indices = @transform_5, window_bounds = array<i64: 1, 32>}, {pipeline_mode = #tpu.pipeline_mode<synchronous>, transform_indices = @transform_6, window_bounds = array<i64: 1, 1>}, {transform_indices = @transform_7, window_bounds = array<i64: 1, 8>}]} {
    %c0 = arith.constant 0 : index
    %c0_0 = arith.constant 0 : index
    %0 = vector.load %arg1[%c0, %c0_0] : memref<8x16xf32, #tpu.memory_space<vmem>>, vector<8x16xf32>
    %c0_1 = arith.constant 0 : index
    %c0_2 = arith.constant 0 : index
    %1 = vector.load %arg2[%c0_1, %c0_2] : memref<16x32xf32, #tpu.memory_space<vmem>>, vector<16x32xf32>
    %cst = arith.constant dense<0.000000e+00> : vector<8x32xf32>
    %2 = tpu.matmul %0, %1, %cst {dimension_numbers = #tpu.dot_dimension_numbers<[1], [0], [0], [1], [0, 0, 1, 1], [], []>} : vector<8x16xf32>, vector<16x32xf32>, vector<8x32xf32> -> vector<8x32xf32>
    %c0_3 = arith.constant 0 : index
    %c0_4 = arith.constant 0 : index
    %3 = vector.load %arg3[%c0_3, %c0_4] : memref<1x32xf32, #tpu.memory_space<vmem>>, vector<1x32xf32>
    %4 = vector.broadcast %3 : vector<1x32xf32> to vector<8x32xf32>
    %5 = arith.addf %2, %4 : vector<8x32xf32>
    %cst_5 = arith.constant 0.000000e+00 : f32
    %6 = vector.broadcast %cst_5 : f32 to vector<8x32xf32>
    %7 = arith.maximumf %5, %6 : vector<8x32xf32>
    %c0_6 = arith.constant 0 : index
    %c0_7 = arith.constant 0 : index
    %8 = vector.load %arg4[%c0_6, %c0_7] : memref<32x32xf32, #tpu.memory_space<vmem>>, vector<32x32xf32>
    %cst_8 = arith.constant dense<0.000000e+00> : vector<8x32xf32>
    %9 = tpu.matmul %7, %8, %cst_8 {dimension_numbers = #tpu.dot_dimension_numbers<[1], [0], [0], [1], [0, 0, 1, 1], [], []>} : vector<8x32xf32>, vector<32x32xf32>, vector<8x32xf32> -> vector<8x32xf32>
    %c0_9 = arith.constant 0 : index
    %c0_10 = arith.constant 0 : index
    %10 = vector.load %arg5[%c0_9, %c0_10] : memref<1x32xf32, #tpu.memory_space<vmem>>, vector<1x32xf32>
    %11 = vector.broadcast %10 : vector<1x32xf32> to vector<8x32xf32>
    %12 = arith.addf %9, %11 : vector<8x32xf32>
    %cst_11 = arith.constant 0.000000e+00 : f32
    %13 = vector.broadcast %cst_11 : f32 to vector<8x32xf32>
    %14 = arith.maximumf %12, %13 : vector<8x32xf32>
    %c0_12 = arith.constant 0 : index
    %c0_13 = arith.constant 0 : index
    %15 = vector.load %arg6[%c0_12, %c0_13] : memref<1x32xf32, #tpu.memory_space<vmem>>, vector<1x32xf32>
    %16 = vector.broadcast %15 : vector<1x32xf32> to vector<8x32xf32>
    %17 = arith.mulf %14, %16 : vector<8x32xf32>
    %cst_14 = arith.constant dense<0.000000e+00> : vector<8xf32>
    %18 = vector.multi_reduction <add>, %17, %cst_14 [1] : vector<8x32xf32> to vector<8xf32>
    %19 = vector.shape_cast %18 : vector<8xf32> to vector<1x8xf32>
    %c0_15 = arith.constant 0 : index
    %c0_16 = arith.constant 0 : index
    %20 = vector.load %arg7[%c0_15, %c0_16] : memref<1x1xf32, #tpu.memory_space<vmem>>, vector<1x1xf32>
    %21 = vector.broadcast %20 : vector<1x1xf32> to vector<1x8xf32>
    %22 = arith.addf %19, %21 : vector<1x8xf32>
    %c0_17 = arith.constant 0 : index
    %c0_18 = arith.constant 0 : index
    %23 = vector.load %arg8[%c0_17, %c0_18] : memref<1x8xf32, #tpu.memory_space<vmem>>, vector<1x8xf32>
    tpu.vector_store %arg8[%c0_17, %c0_18], %22 {strides = array<i32>} : memref<1x8xf32, #tpu.memory_space<vmem>>, vector<1x8xf32>,
    return
  }
  func.func @transform_0(%arg0: i32) -> (i32, i32) {
    %c0_i32 = arith.constant 0 : i32
    %c0_i32_0 = arith.constant 0 : i32
    return %arg0, %c0_i32 : i32, i32
  }
  func.func @transform_1(%arg0: i32) -> (i32, i32) {
    %c0_i32 = arith.constant 0 : i32
    %c0_i32_0 = arith.constant 0 : i32
    %c0_i32_1 = arith.constant 0 : i32
    return %c0_i32, %c0_i32_0 : i32, i32
  }
  func.func @transform_2(%arg0: i32) -> (i32, i32) {
    %c0_i32 = arith.constant 0 : i32
    %c0_i32_0 = arith.constant 0 : i32
    %c0_i32_1 = arith.constant 0 : i32
    return %c0_i32, %c0_i32_0 : i32, i32
  }
  func.func @transform_3(%arg0: i32) -> (i32, i32) {
    %c0_i32 = arith.constant 0 : i32
    %c0_i32_0 = arith.constant 0 : i32
    %c0_i32_1 = arith.constant 0 : i32
    return %c0_i32, %c0_i32_0 : i32, i32
  }
  func.func @transform_4(%arg0: i32) -> (i32, i32) {
    %c0_i32 = arith.constant 0 : i32
    %c0_i32_0 = arith.constant 0 : i32
    %c0_i32_1 = arith.constant 0 : i32
    return %c0_i32, %c0_i32_0 : i32, i32
  }
  func.func @transform_5(%arg0: i32) -> (i32, i32) {
    %c0_i32 = arith.constant 0 : i32
    %c0_i32_0 = arith.constant 0 : i32
    %c0_i32_1 = arith.constant 0 : i32
    return %c0_i32, %c0_i32_0 : i32, i32
  }
  func.func @transform_6(%arg0: i32) -> (i32, i32) {
    %c0_i32 = arith.constant 0 : i32
    %c0_i32_0 = arith.constant 0 : i32
    %c0_i32_1 = arith.constant 0 : i32
    return %c0_i32, %c0_i32_0 : i32, i32
  }
  func.func @transform_7(%arg0: i32) -> (i32, i32) {
    %c0_i32 = arith.constant 0 : i32
    %c0_i32_0 = arith.constant 0 : i32
    return %c0_i32, %arg0 : i32, i32
  }
}

</mosaic_0001>

<bundles_post_ra>
// kernel: tpu_custom_call.1
= control target key start
LH: loop header
LB: loop body
LE: loop exit
PB: predicated region body
PF: predicated region fallthrough
CT: control target
= control target key end

     0   :  { %s487_s0 = inlined_call_operand.hbm [shape: f32[8,16], index: 0, kind: input, shape index: {}]   ;;  %s488_s1 = inlined_call_operand.hbm [shape: f32[16,32], index: 1, kind: input, shape index: {}]   ;;  %s489_s2 = inlined_call_operand.vmem [shape: f32[1,32], index: 2, kind: input, shape index: {}]   ;;  %s490_s3 = inlined_call_operand.hbm [shape: f32[32,32], index: 3, kind: input, shape index: {}]   ;;  %s491_s4 = inlined_call_operand.vmem [shape: f32[1,32], index: 4, kind: input, shape index: {}]   ;;  %s492_s5 = inlined_call_operand.vmem [shape: f32[1,32], index: 5, kind: input, shape index: {}]   ;;  %s493_s6 = inlined_call_operand.<no memory space> [shape: f32[1,1], index: 6, kind: input, shape index: {}]   ;;  %s494_s7 = inlined_call_operand.hbm [shape: f32[1,8], index: 7, kind: output, shape index: {}]  }
   0x1   :  { %v12_v0 = vstv %s493_s6 }
   0x2   :  { %13 = vst [vmem:[#allocation2] sm:$0x1] %v12_v0 }
   0x3   :  { %14 = vsyncpa [#allocation4], 0 }
   0x4   :  { %15 = vsyncpa [#allocation7], 0 }
   0x5   :  { %16 = vsyncpa [#allocation5], 0  ;;  %s414_s26 = smov [#allocation6]  }
   0x6   :  { %s32_s27 = sshll.u32 %s414_s26, 4  ;;  %s33_s27 = int_to_ptr.vmem [resolvable:$true] %s32_s27 }
   0x7   :  { %s336_s28 = scalar_lea.vmem %s33_s27, 256  ;;  %p341_p1 = scmp.lt.s32.totalorder %s33_s27, %s33_s27 }
   0x8   :  { %p337_p0 = scmp.ne.s32.totalorder %s33_s27, %s336_s28  ;;  %p342_p2 = scmp.lt.s32.totalorder %s336_s28, %s336_s28 }
   0xa   :  { %p343_p3 = por %p342_p2, %p341_p1 }
   0xc   :  { %p344_p4 = pnand %p343_p3, %p337_p0 }
   0xe   :  { %347 = shalt.err (!%p344_p4)
}
   0xf   :  { %s415_s29 = smov 128   ;;  %s416_s30 = smov 8  }
  0x10   :  { %38 = dma.hbm_to_vmem [thread:$0]  %s488_s1, 256, %s33_s27, [#allocation7], %s415_s29, %s415_s29, %s416_s30  }
  0x11   :  { %s417_s6 = smov [#allocation3]   ;;  %s418_s11 = smov [#allocation8]  }
  0x12   :  { %s23_s10 = sshll.u32 %s417_s6, 4  ;;  %s46_s12 = sshll.u32 %s418_s11, 4  ;;  %s24_s10 = int_to_ptr.vmem [resolvable:$true] %s23_s10  ;;  %s47_s12 = int_to_ptr.vmem [resolvable:$true] %s46_s12 }
  0x13   :  { %s356_s13 = scalar_lea.vmem %s24_s10, 128  ;;  %p361_p6 = scmp.lt.s32.totalorder %s24_s10, %s24_s10 }
  0x14   :  { %p357_p5 = scmp.ne.s32.totalorder %s24_s10, %s356_s13  ;;  %p362_p7 = scmp.lt.s32.totalorder %s356_s13, %s356_s13 }
  0x16   :  { %p363_p8 = por %p362_p7, %p361_p6 }
  0x18   :  { %p364_p9 = pnand %p363_p8, %p357_p5 }
  0x1a   :  { %367 = shalt.err (!%p364_p9)
}
  0x1b   :  { %26 = dma.hbm_to_vmem [thread:$0]  %s487_s0, 128, %s24_s10, [#allocation4]  }
  0x1c   :  { %s376_s16 = scalar_lea.vmem %s47_s12, 512  ;;  %p381_p11 = scmp.lt.s32.totalorder %s47_s12, %s47_s12 }
  0x1d   :  { %p377_p10 = scmp.ne.s32.totalorder %s47_s12, %s376_s16  ;;  %p382_p12 = scmp.lt.s32.totalorder %s376_s16, %s376_s16 }
  0x1f   :  { %p383_p13 = por %p382_p12, %p381_p11 }
  0x21   :  { %p384_p0 = pnand %p383_p13, %p377_p10 }
  0x23   :  { %387 = shalt.err (!%p384_p0)
}
  0x24   :  { %52 = dma.hbm_to_vmem [thread:$0]  %s490_s3, 512, %s47_s12, [#allocation7], %s415_s29, %s415_s29, %s416_s30  }
  0x25   :  { %408 = dma.done.wait [#allocation4], 128  }
  0x26   :  { %409 = vsyncadd [#allocation4], 4294967168 }
  0x27   :  { %410 = dma.done.wait [#allocation7], 768  }
  0x28   :  { %411 = vsyncadd [#allocation7], 4294966528  ;;  %v419_v1 = vmov 0.0   ;;  %vm420_vm0 = vmmov 0   ;;  %v70_v2 = vld [vmem:[#allocation6 + $0x8] sm:$0xff]  ;;  %v69_v3 = vld [vmem:[#allocation6] sm:$0xff]  ;;  %v256_v24 = vlaneseq }
  0x29   :  { %300 = vmatprep.subr.mxu0 %v419_v1  ;;  %304 = vmatprep.mubr.msk.f32.mxu0 %vm420_vm0, %v419_v1  ;;  %v68_v4 = vld [vmem:[#allocation3] sm:$0xff]  ;;  %vm78_vm1 = vcmask 130048   ;;  %v156_v5 = vld [vmem:[#allocation8 + $0x18] sm:$0xff]  ;;  %v155_v6 = vld [vmem:[#allocation8 + $0x10] sm:$0xff]  ;;  %vm164_vm2 = vcmask 261120   ;;  %v421_v14 = vmov 0  }
  0x2a   :  { %307 = vmatprep.subr.mxu1 %v419_v1  ;;  %315 = vmatprep.mubr.msk.f32.mxu1 %vm420_vm0, %v419_v1  ;;  %v154_v7 = vld [vmem:[#allocation8 + $0x8] sm:$0xff]  ;;  %v153_v8 = vld [vmem:[#allocation8] sm:$0xff]  ;;  %v257_v25 = vshrl.u32 %v256_v24, 7  ;;  %v263_v28 = vand.u32 127, %v256_v24  ;;  %vm269_vm3 = vcmask 57344  }
  0x2b   :  { %301 = vmatpush3.msra.mxu0 %v70_v2  ;;  %308 = vmatpush3.msra.mxu1 %v156_v5  ;;  %v287_v9 = vld [vmem:[%s489_s2] ss:$0 sm:$0xff]  ;;  %s422_s2 = smov [#allocation9]  }
  0x2c   :  { %302 = vmatprep.subr.mxu0 %v419_v1  ;;  %309 = vmatprep.subr.mxu1 %v419_v1  ;;  %v289_v15 = vld [vmem:[%s491_s4] ss:$0 sm:$0xff]  ;;  %v258_v27 = vsub.s32 0, %v257_v25  ;;  %v266_v30 = vsub.s32 %v263_v28, %v257_v25  ;;  %s277_s4 = sshll.u32 %s422_s2, 4  ;;  %s278_s4 = int_to_ptr.vmem [resolvable:$true] %s277_s4 }
  0x2d   :  { %303 = vmatpush3.msra.mxu0 %v69_v3  ;;  %310 = vmatpush3.msra.mxu1 %v155_v6  ;;  %v291_v19 = vld [vmem:[%s492_s5] ss:$0 sm:$0xff]  ;;  %s388_s5 = scalar_lea.vmem %s278_s4, 16  ;;  %s392_s22 = scalar_lea.vmem %s278_s4, 32 }
  0x2e   :  { %305 = vmatmul.mubr.msk.f32.vlgmr.msra.gmra.mxu0 %vm78_vm1, %v68_v4  ;;  %311 = vmatprep.subr.mxu1 %v419_v1  ;;  %v250_v23 = vld [vmem:[#allocation2] sm:$0x1]  ;;  %p389_p1 = scmp.ne.s32.totalorder %s278_s4, %s388_s5  ;;  %p393_p2 = scmp.lt.s32.totalorder %s278_s4, %s278_s4 }
  0x2f   :  { %312 = vmatpush3.msra.mxu1 %v154_v7  ;;  %327 = vset.pattern.permute.xlu0 %v421_v14  ;;  %p394_p3 = scmp.lt.s32.totalorder %s392_s22, %s388_s5 }
  0x30   :  { %313 = vmatprep.subr.mxu1 %v419_v1 }
  0x31   :  { %314 = vmatpush3.msra.mxu1 %v153_v8  ;;  %p395_p4 = por %p394_p3, %p393_p2 }
  0x33   :  { %p396_p5 = pnand %p395_p4, %p389_p1 }
  0xee   :  { %v148_v10 = vpop.f32.mrf.mxu0 }
  0xef   :  { %v149_v11 = vadd.f32 %v287_v9, %v148_v10 }
  0xf0   :  { %v306_v12 = vpop.f32.mrf.mxu0 }
  0xf1   :  { %v152_v13 = vmax.f32 %v149_v11, 0.0 }
  0xf3   :  { %316 = vmatmul.mubr.msk.f32.vlgmr.msra.gmra.mxu1 %vm164_vm2, %v152_v13 }
 0x1b3   :  { %v234_v16 = vpop.f32.mrf.mxu1 }
 0x1b4   :  { %v235_v17 = vadd.f32 %v289_v15, %v234_v16 }
 0x1b5   :  { %v317_v18 = vpop.f32.mrf.mxu1 }
 0x1b6   :  { %v238_v20 = vmax.f32 %v235_v17, 0.0 }
 0x1b8   :  { %v246_v21 = vmul.f32 %v291_v19, %v238_v20 }
 0x1ba   :  { %v247_v22 = vsel %vm164_vm2, %v246_v21, 0.0 }
 0x1bb   :  { %248 = vadd.xlane.f32.xlu0 %v247_v22 }
 0x1d1   :  { %253 = vperm.xlu0 %327, %v250_v23  }
 0x244   :  { %v249_v26 = vpop.xlane.xlu0 %248 }
 0x24c   :  { %v254_v29 = vpop.permute.xlu0 %253 }
 0x24d   :  { %v259_v31 = vrot.slane %v254_v29, %v258_v27 }
 0x24f   :  { %v260_v32 = vadd.f32 %v259_v31, %v249_v26 }
 0x251   :  { %v267_v33 = vrot.slane %v260_v32, %v266_v30 }
 0x253   :  { %270 = vst.msk [vmem:[#allocation9] sm:$0x1] %vm269_vm3, %v267_v33 }
 0x254   :  { %399 = shalt.err (!%p396_p5)
}
 0x255   :  { %280 = dma.vmem_to_hbm [thread:$0]  %s278_s4, 16, %s494_s7, [#allocation5]  }
 0x256   :  { %412 = dma.done.wait [#allocation5], 16  }
 0x257   :  { %413 = vsyncadd [#allocation5], 4294967280 }
 0x258   :  { %284 = vsyncpa [#allocation4], 1 }
 0x259   :  { %285 = vsyncpa [#allocation7], 1 }
 0x25a   :  { %286 = vsyncpa [#allocation5], 1 }

</bundles_post_ra>
